<compile_context>
chip_gen: v5e
topology: v5e:2x2
jax: 0.10.0
libtpu: 0.0.40
codegen_flags: <defaults>
</compile_context>

<pallas_src>
import jax
import jax.numpy as jnp
from jax.experimental import pallas as pl
from jax.experimental.pallas import tpu as pltpu


# ----------------------------------------------------------------------------
# Kernels
# ----------------------------------------------------------------------------
def _matmul_bias_kernel(x_ref, w_ref, b_ref, o_ref):
    # x: (tile_n, D) bf16, w: (D, K_pad) bf16 (fully resident),
    # b: (1, K_pad) f32, o: (tile_n, K_pad) f32
    o_ref[...] = (jnp.dot(x_ref[...], w_ref[...],
                          preferred_element_type=jnp.float32)
                  + b_ref[...]).astype(o_ref.dtype)


def _matmul_bias_acc_kernel(x_ref, w_ref, b_ref, o_ref):
    # Reduction-over-D fallback: the output block index is constant across kd,
    # so accumulate directly into the f32 output block (no scratch, no copy).
    kd = pl.program_id(1)

    @pl.when(kd == 0)
    def _init():
        o_ref[...] = jnp.broadcast_to(b_ref[...], o_ref.shape)

    o_ref[...] += jnp.dot(x_ref[...], w_ref[...],
                          preferred_element_type=jnp.float32)


# ----------------------------------------------------------------------------
# Parameter preparation (done once at module init, NOT in the forward path)
# ----------------------------------------------------------------------------
def normalizer_init(mu, sigma, w, b, hw, compute_dtype=jnp.bfloat16):
    """Fold (x - mu)/sigma into the flatten->linear classifier parameters."""
    d, k = w.shape
    inv_sigma = 1.0 / sigma.astype(jnp.float32)                       # (C,)
    scale = jnp.repeat(inv_sigma, hw)                                 # (D,)
    shift = jnp.repeat(-mu.astype(jnp.float32) * inv_sigma, hw)       # (D,)

    w_f = w.astype(jnp.float32)
    w_fold = w_f * scale[:, None]                                     # (D, K)
    b_fold = b.astype(jnp.float32) + shift @ w_f                      # (K,)

    # Lane-dense padded class axis (unmasked vst, full MXU output lanes).
    k_pad = ((k + 127) // 128) * 128
    w_p = jnp.zeros((d, k_pad), compute_dtype).at[:, :k].set(
        w_fold.astype(compute_dtype))
    b_p = jnp.zeros((1, k_pad), jnp.float32).at[0, :k].set(b_fold)
    return {"w": w_p, "b": b_p, "num_classes": k}


def _pick_tile_n(n_pad, d, elem_bytes, x_tile_budget):
    for cand in (256, 128, 64, 32, 16, 8):
        if n_pad % cand == 0 and cand * d * elem_bytes <= x_tile_budget:
            return cand
    return 8


# ----------------------------------------------------------------------------
# Forward
# ----------------------------------------------------------------------------
def normalizer_forward(x_nchw, params):
    n, c, h, w_sp = x_nchw.shape
    d = c * h * w_sp
    w_p, b_p, k = params["w"], params["b"], params["num_classes"]
    assert w_p.shape[0] == d
    k_pad = w_p.shape[1]
    dt = w_p.dtype
    eb = jnp.dtype(dt).itemsize

    # Flatten NCHW lane-dense to (N, D); pad batch to a multiple of 8 sublanes.
    x_flat = x_nchw.reshape(n, d).astype(dt)
    n_pad = ((max(n, 8) + 7) // 8) * 8
    if n_pad != n:
        x_flat = jnp.zeros((n_pad, d), dt).at[:n].set(x_flat)

    # Conservative VMEM budget (v7x: 64 MiB physical / 32 MiB scoped default).
    vmem_budget = 24 * 1024 * 1024
    tile_n = _pick_tile_n(n_pad, d, eb, 4 * 1024 * 1024)
    w_bytes = d * k_pad * eb
    footprint = w_bytes + 2 * tile_n * d * eb + 2 * tile_n * k_pad * 4

    if d % 128 == 0 and footprint <= vmem_budget:
        # W fully resident in VMEM: one grid axis over the batch, no reduction.
        out = pl.pallas_call(
            _matmul_bias_kernel,
            out_shape=jax.ShapeDtypeStruct((n_pad, k_pad), jnp.float32),
            grid_spec=pltpu.PrefetchScalarGridSpec(
                num_scalar_prefetch=0,
                grid=(n_pad // tile_n,),
                in_specs=[
                    pl.BlockSpec((tile_n, d), lambda i: (i, 0)),      # x
                    pl.BlockSpec((d, k_pad), lambda i: (0, 0)),       # W (resident)
                    pl.BlockSpec((1, k_pad), lambda i: (0, 0)),       # bias
                ],
                out_specs=pl.BlockSpec((tile_n, k_pad), lambda i: (i, 0)),
            ),
            compiler_params=pltpu.CompilerParams(
                dimension_semantics=("parallel",),
                vmem_limit_bytes=32 * 1024 * 1024,
            ),
        )(x_flat, w_p, b_p)
    else:
        # Large-D fallback: tile the reduction axis (last), accumulate into the
        # f32 output block directly.
        assert d % 128 == 0, "D must be a multiple of 128 for the tiled path"
        tile_d = next(t for t in (1024, 512, 256, 128) if d % t == 0)
        out = pl.pallas_call(
            _matmul_bias_acc_kernel,
            out_shape=jax.ShapeDtypeStruct((n_pad, k_pad), jnp.float32),
            grid_spec=pltpu.PrefetchScalarGridSpec(
                num_scalar_prefetch=0,
                grid=(n_pad // tile_n, d // tile_d),
                in_specs=[
                    pl.BlockSpec((tile_n, tile_d), lambda i, kd: (i, kd)),   # x
                    pl.BlockSpec((tile_d, k_pad), lambda i, kd: (kd, 0)),    # W
                    pl.BlockSpec((1, k_pad), lambda i, kd: (0, 0)),          # bias
                ],
                out_specs=pl.BlockSpec((tile_n, k_pad), lambda i, kd: (i, 0)),
            ),
            compiler_params=pltpu.CompilerParams(
                dimension_semantics=("parallel", "arbitrary"),
                vmem_limit_bytes=32 * 1024 * 1024,
            ),
        )(x_flat, w_p, b_p)

    return out[:n, :k]


if __name__ == "__main__":
    key = jax.random.PRNGKey(0)
    k_x, k_w, k_b = jax.random.split(key, 3)

    # Small NCHW image batch, values in [0, 1] as the module's docstring states.
    N, C, H, W = 2, 3, 16, 16
    NUM_CLASSES = 10

    x = jax.random.uniform(k_x, (N, C, H, W), dtype=jnp.float32)

    # Buffers from the PyTorch module (ImageNet defaults).
    mu = jnp.array([0.485, 0.456, 0.406], dtype=jnp.float32)
    sigma = jnp.array([0.229, 0.224, 0.225], dtype=jnp.float32)

    # Deterministic synthetic classifier parameters (flatten -> linear).
    D = C * H * W
    w = (jax.random.normal(k_w, (D, NUM_CLASSES), dtype=jnp.float32)
         * (1.0 / jnp.sqrt(D)))
    b = jax.random.normal(k_b, (NUM_CLASSES,), dtype=jnp.float32) * 0.01

    # One-time parameter fold (kept out of the forward hot path).
    params = normalizer_init(mu, sigma, w, b, hw=H * W)

    out = normalizer_forward(x, params)
    out = jax.block_until_ready(out)

    # Pure-JAX f32 reference for a correctness sanity check (tolerances
    # relaxed for the bf16 operand path).
    x_ref = (x - mu.reshape(1, C, 1, 1)) / sigma.reshape(1, C, 1, 1)
    ref = x_ref.reshape(N, -1) @ w + b.reshape(1, -1)
    assert out.shape == (N, NUM_CLASSES)
    assert jnp.allclose(out, ref, atol=5e-2, rtol=5e-2), \
        float(jnp.max(jnp.abs(out - ref)))

    print("KERNEL_OK")
</pallas_src>

<mosaic_0001>
module attributes {stable_mosaic.version = 11 : i64} {
  func.func @_matmul_bias_kernel(%arg0: i32, %arg1: memref<8x768xbf16, #tpu.memory_space<vmem>>, %arg2: memref<768x128xbf16, #tpu.memory_space<vmem>>, %arg3: memref<1x128xf32, #tpu.memory_space<vmem>>, %arg4: memref<8x128xf32, #tpu.memory_space<vmem>>) attributes {dimension_semantics = [#tpu.dimension_semantics<parallel>], iteration_bounds = array<i64: 1>, scalar_prefetch = 0 : i64, scratch_operands = 0 : i64, tpu.core_type = #tpu.core_type<tc>, window_params = [{transform_indices = @transform_0, window_bounds = array<i64: 8, 768>}, {pipeline_mode = #tpu.pipeline_mode<synchronous>, transform_indices = @transform_1, window_bounds = array<i64: 768, 128>}, {pipeline_mode = #tpu.pipeline_mode<synchronous>, transform_indices = @transform_2, window_bounds = array<i64: 1, 128>}, {transform_indices = @transform_3, window_bounds = array<i64: 8, 128>}]} {
    %c0 = arith.constant 0 : index
    %c0_0 = arith.constant 0 : index
    %0 = vector.load %arg1[%c0, %c0_0] : memref<8x768xbf16, #tpu.memory_space<vmem>>, vector<8x768xbf16>
    %c0_1 = arith.constant 0 : index
    %c0_2 = arith.constant 0 : index
    %1 = vector.load %arg2[%c0_1, %c0_2] : memref<768x128xbf16, #tpu.memory_space<vmem>>, vector<768x128xbf16>
    %cst = arith.constant dense<0.000000e+00> : vector<8x128xf32>
    %2 = tpu.matmul %0, %1, %cst {dimension_numbers = #tpu.dot_dimension_numbers<[1], [0], [0], [1], [0, 0, 1, 1], [], []>} : vector<8x768xbf16>, vector<768x128xbf16>, vector<8x128xf32> -> vector<8x128xf32>
    %c0_3 = arith.constant 0 : index
    %c0_4 = arith.constant 0 : index
    %3 = vector.load %arg3[%c0_3, %c0_4] : memref<1x128xf32, #tpu.memory_space<vmem>>, vector<1x128xf32>
    %4 = vector.broadcast %3 : vector<1x128xf32> to vector<8x128xf32>
    %5 = arith.addf %2, %4 : vector<8x128xf32>
    %c0_5 = arith.constant 0 : index
    %c0_6 = arith.constant 0 : index
    %6 = vector.load %arg4[%c0_5, %c0_6] : memref<8x128xf32, #tpu.memory_space<vmem>>, vector<8x128xf32>
    tpu.vector_store %arg4[%c0_5, %c0_6], %5 {strides = array<i32>} : memref<8x128xf32, #tpu.memory_space<vmem>>, vector<8x128xf32>,
    return
  }
  func.func @transform_0(%arg0: i32) -> (i32, i32) {
    %c0_i32 = arith.constant 0 : i32
    %c0_i32_0 = arith.constant 0 : i32
    return %arg0, %c0_i32 : i32, i32
  }
  func.func @transform_1(%arg0: i32) -> (i32, i32) {
    %c0_i32 = arith.constant 0 : i32
    %c0_i32_0 = arith.constant 0 : i32
    %c0_i32_1 = arith.constant 0 : i32
    return %c0_i32, %c0_i32_0 : i32, i32
  }
  func.func @transform_2(%arg0: i32) -> (i32, i32) {
    %c0_i32 = arith.constant 0 : i32
    %c0_i32_0 = arith.constant 0 : i32
    %c0_i32_1 = arith.constant 0 : i32
    return %c0_i32, %c0_i32_0 : i32, i32
  }
  func.func @transform_3(%arg0: i32) -> (i32, i32) {
    %c0_i32 = arith.constant 0 : i32
    %c0_i32_0 = arith.constant 0 : i32
    return %arg0, %c0_i32 : i32, i32
  }
}

</mosaic_0001>

<bundles_post_ra>
// kernel: tpu_custom_call.1
= control target key start
LH: loop header
LB: loop body
LE: loop exit
PB: predicated region body
PF: predicated region fallthrough
CT: control target
= control target key end

     0   :  { %8 = vsyncpa [#allocation3], 0  ;;  %s915_s0 = inlined_call_operand.hbm [shape: bf16[8,768], index: 0, kind: input, shape index: {}]   ;;  %s916_s1 = inlined_call_operand.hbm [shape: bf16[768,128], index: 1, kind: input, shape index: {}]   ;;  %s917_s2 = inlined_call_operand.vmem [shape: f32[1,128], index: 2, kind: input, shape index: {}]   ;;  %s918_s3 = inlined_call_operand.hbm [shape: f32[8,128], index: 3, kind: output, shape index: {}]  }
   0x1   :  { %9 = vsyncpa [#allocation6], 0 }
   0x2   :  { %10 = vsyncpa [#allocation4], 0  ;;  %s16_s14 = sshll.u32 %s915_s0, 4  ;;  %s878_s15 = smov [#allocation2]   ;;  %s17_s14 = int_to_ptr.hbm [resolvable:$true] %s16_s14 }
   0x3   :  { %s18_s16 = sshll.u32 %s878_s15, 4  ;;  %s26_s19 = sshll.u32 %s916_s1, 4  ;;  %s19_s16 = int_to_ptr.vmem [resolvable:$true] %s18_s16  ;;  %s27_s19 = int_to_ptr.hbm [resolvable:$true] %s26_s19 }
   0x4   :  { %21 = dma.hbm_to_vmem [thread:$0]  %s17_s14, 384, %s19_s16, [#allocation3]  }
   0x5   :  { %s879_s20 = smov [#allocation5]   ;;  %s880_s22 = smov 64  }
   0x6   :  { %s28_s21 = sshll.u32 %s879_s20, 4  ;;  %s881_s23 = smov 4   ;;  %s29_s21 = int_to_ptr.vmem [resolvable:$true] %s28_s21 }
   0x7   :  { %34 = dma.hbm_to_vmem [thread:$0]  %s27_s19, 6144, %s29_s21, [#allocation6], %s880_s22, %s880_s22, %s881_s23  }
   0x8   :  { %872 = dma.done.wait [#allocation3], 384  }
   0x9   :  { %873 = vsyncadd [#allocation3], 4294966912 }
   0xa   :  { %874 = dma.done.wait [#allocation6], 6144  }
   0xb   :  { %875 = vsyncadd [#allocation6], 4294961152  ;;  %v753_v0 = vld [vmem:[#allocation5 + $0x38] sm:$0xff]  ;;  %v752_v2 = vld [vmem:[#allocation5 + $0x30] sm:$0xff]  ;;  %s882_s24 = smov [#allocation7]   ;;  %s543_s28 = sshll.u32 %s918_s3, 4  ;;  %s544_s28 = int_to_ptr.hbm [resolvable:$true] %s543_s28 }
   0xc   :  { %v761_v1 = vld [vmem:[#allocation5 + $0x78] sm:$0xff]  ;;  %457 = vmatpush.bf16.msra.mxu0 %v753_v0  ;;  %v760_v3 = vld [vmem:[#allocation5 + $0x70] sm:$0xff]  ;;  %v751_v8 = vld [vmem:[#allocation5 + $0x28] sm:$0xff]  ;;  %s541_s25 = sshll.u32 %s882_s24, 4  ;;  %s542_s25 = int_to_ptr.vmem [resolvable:$true] %s541_s25 }
   0xd   :  { %470 = vmatpush.bf16.msra.mxu1 %v761_v1  ;;  %v769_v4 = vld [vmem:[#allocation5 + $0xb8] sm:$0xff]  ;;  %v768_v6 = vld [vmem:[#allocation5 + $0xb0] sm:$0xff]  ;;  %v759_v9 = vld [vmem:[#allocation5 + $0x68] sm:$0xff] }
   0xe   :  { %v777_v5 = vld [vmem:[#allocation5 + $0xf8] sm:$0xff]  ;;  %483 = vmatpush.bf16.msra.mxu2 %v769_v4  ;;  %v776_v7 = vld [vmem:[#allocation5 + $0xf0] sm:$0xff]  ;;  %v767_v10 = vld [vmem:[#allocation5 + $0xa8] sm:$0xff] }
   0xf   :  { %496 = vmatpush.bf16.msra.mxu3 %v777_v5  ;;  %v775_v11 = vld [vmem:[#allocation5 + $0xe8] sm:$0xff]  ;;  %v750_v12 = vld [vmem:[#allocation5 + $0x20] sm:$0xff]  ;;  %v749_v16 = vld [vmem:[#allocation5 + $0x18] sm:$0xff] }
  0x10   :  { %458 = vmatpush.bf16.msra.mxu0 %v752_v2  ;;  %v758_v13 = vld [vmem:[#allocation5 + $0x60] sm:$0xff]  ;;  %v757_v17 = vld [vmem:[#allocation5 + $0x58] sm:$0xff]  ;;  %v748_v20 = vld [vmem:[#allocation5 + $0x10] sm:$0xff] }
  0x11   :  { %471 = vmatpush.bf16.msra.mxu1 %v760_v3  ;;  %v766_v14 = vld [vmem:[#allocation5 + $0xa0] sm:$0xff]  ;;  %v765_v18 = vld [vmem:[#allocation5 + $0x98] sm:$0xff]  ;;  %v756_v21 = vld [vmem:[#allocation5 + $0x50] sm:$0xff] }
  0x12   :  { %484 = vmatpush.bf16.msra.mxu2 %v768_v6  ;;  %v774_v15 = vld [vmem:[#allocation5 + $0xe0] sm:$0xff]  ;;  %v773_v19 = vld [vmem:[#allocation5 + $0xd8] sm:$0xff]  ;;  %v764_v22 = vld [vmem:[#allocation5 + $0x90] sm:$0xff] }
  0x13   :  { %497 = vmatpush.bf16.msra.mxu3 %v776_v7  ;;  %v772_v23 = vld [vmem:[#allocation5 + $0xd0] sm:$0xff]  ;;  %v747_v24 = vld [vmem:[#allocation5 + $0x8] sm:$0xff]  ;;  %v746_v32 = vld [vmem:[#allocation5] sm:$0xff] }
  0x14   :  { %459 = vmatpush.bf16.msra.mxu0 %v751_v8  ;;  %v755_v25 = vld [vmem:[#allocation5 + $0x48] sm:$0xff]  ;;  %v46_v31 = vld [vmem:[#allocation2 + $0x8] sm:$0xff]  ;;  %v754_v33 = vld [vmem:[#allocation5 + $0x40] sm:$0xff] }
  0x15   :  { %472 = vmatpush.bf16.msra.mxu1 %v759_v9  ;;  %v45_v26 = vld [vmem:[#allocation2] sm:$0xff]  ;;  %v785_v34 = vld [vmem:[#allocation5 + $0x138] sm:$0xff]  ;;  %v762_v36 = vld [vmem:[#allocation5 + $0x80] sm:$0xff]  ;;  %v153_v38 = vunpack.c.l.b16 %v46_v31  ;;  %v154_v39 = vunpack.c.h.b16 %v46_v31 }
  0x16   :  { %485 = vmatpush.bf16.msra.mxu2 %v767_v10  ;;  %v763_v27 = vld [vmem:[#allocation5 + $0x88] sm:$0xff]  ;;  %v151_v29 = vunpack.c.l.b16 %v45_v26  ;;  %v152_v30 = vunpack.c.h.b16 %v45_v26  ;;  %v793_v35 = vld [vmem:[#allocation5 + $0x178] sm:$0xff]  ;;  %v770_v37 = vld [vmem:[#allocation5 + $0xc0] sm:$0xff] }
  0x17   :  { %498 = vmatpush.bf16.msra.mxu3 %v775_v11  ;;  %v771_v28 = vld [vmem:[#allocation5 + $0xc8] sm:$0xff]  ;;  %v784_v42 = vld [vmem:[#allocation5 + $0x130] sm:$0xff]  ;;  %v159_v44 = vpack.c.b16 %v153_v38, %v153_v38  ;;  %v160_v45 = vpack.c.b16 %v154_v39, %v154_v39  ;;  %v782_v48 = vld [vmem:[#allocation5 + $0x120] sm:$0xff] }
  0x18   :  { %460 = vmatpush.bf16.msra.mxu0 %v750_v12  ;;  %v157_v40 = vpack.c.b16 %v151_v29, %v151_v29  ;;  %v158_v41 = vpack.c.b16 %v152_v30, %v152_v30  ;;  %v792_v43 = vld [vmem:[#allocation5 + $0x170] sm:$0xff]  ;;  %v783_v46 = vld [vmem:[#allocation5 + $0x128] sm:$0xff]  ;;  %v790_v49 = vld [vmem:[#allocation5 + $0x160] sm:$0xff] }
  0x19   :  { %473 = vmatpush.bf16.msra.mxu1 %v758_v13  ;;  %v791_v47 = vld [vmem:[#allocation5 + $0x168] sm:$0xff]  ;;  %v781_v50 = vld [vmem:[#allocation5 + $0x118] sm:$0xff]  ;;  %v780_v52 = vld [vmem:[#allocation5 + $0x110] sm:$0xff] }
  0x1a   :  { %486 = vmatpush.bf16.msra.mxu2 %v766_v14  ;;  %v789_v51 = vld [vmem:[#allocation5 + $0x158] sm:$0xff]  ;;  %v788_v53 = vld [vmem:[#allocation5 + $0x150] sm:$0xff]  ;;  %v779_v54 = vld [vmem:[#allocation5 + $0x108] sm:$0xff] }
  0x1b   :  { %499 = vmatpush.bf16.msra.mxu3 %v774_v15  ;;  %v787_v55 = vld [vmem:[#allocation5 + $0x148] sm:$0xff]  ;;  %v47_v56 = vld [vmem:[#allocation2 + $0x10] sm:$0xff]  ;;  %v778_v59 = vld [vmem:[#allocation5 + $0x100] sm:$0xff] }
  0x1c   :  { %461 = vmatpush.bf16.msra.mxu0 %v749_v16  ;;  %v155_v57 = vunpack.c.l.b16 %v47_v56  ;;  %v156_v58 = vunpack.c.h.b16 %v47_v56  ;;  %v786_v60 = vld [vmem:[#allocation5 + $0x140] sm:$0xff]  ;;  %v799_v5 = vld [vmem:[%s917_s2] ss:$0 sm:$0xff] }
  0x1d   :  { %474 = vmatpush.bf16.msra.mxu1 %v757_v17 }
  0x1e   :  { %487 = vmatpush.bf16.msra.mxu2 %v765_v18  ;;  %v161_v61 = vpack.c.b16 %v155_v57, %v155_v57  ;;  %v162_v62 = vpack.c.b16 %v156_v58, %v156_v58 }
  0x1f   :  { %500 = vmatpush.bf16.msra.mxu3 %v773_v19 }
  0x20   :  { %462 = vmatpush.bf16.msra.mxu0 %v748_v20 }
  0x21   :  { %475 = vmatpush.bf16.msra.mxu1 %v756_v21 }
  0x22   :  { %488 = vmatpush.bf16.msra.mxu2 %v764_v22 }
  0x23   :  { %501 = vmatpush.bf16.msra.mxu3 %v772_v23 }
  0x24   :  { %463 = vmatpush.bf16.msra.mxu0 %v747_v24 }
  0x25   :  { %476 = vmatpush.bf16.msra.mxu1 %v755_v25 }
  0x26   :  { %489 = vmatpush.bf16.msra.mxu2 %v763_v27 }
  0x27   :  { %502 = vmatpush.bf16.msra.mxu3 %v771_v28 }
  0x28   :  { %464 = vmatpush.bf16.msra.mxu0 %v746_v32 }
  0x29   :  { %477 = vmatpush.bf16.msra.mxu1 %v754_v33 }
  0x2a   :  { %490 = vmatpush.bf16.msra.mxu2 %v762_v36 }
  0x2b   :  { %503 = vmatpush.bf16.msra.mxu3 %v770_v37  ;;  %465 = vmatmul.bf16.vlgmr.msra.gmra.mxu0 %v157_v40 }
  0x2c   :  { %509 = vmatpush.bf16.msrb.mxu0 %v785_v34  ;;  %478 = vmatmul.bf16.vlgmr.msra.gmra.mxu1 %v158_v41 }
  0x2d   :  { %522 = vmatpush.bf16.msrb.mxu1 %v793_v35  ;;  %491 = vmatmul.bf16.vlgmr.msra.gmra.mxu2 %v159_v44 }
  0x2e   :  { %504 = vmatmul.bf16.vlgmr.msra.gmra.mxu3 %v160_v45 }
  0x30   :  { %510 = vmatpush.bf16.msrb.mxu0 %v784_v42 }
  0x31   :  { %523 = vmatpush.bf16.msrb.mxu1 %v792_v43 }
  0x34   :  { %511 = vmatpush.bf16.msrb.mxu0 %v783_v46 }
  0x35   :  { %524 = vmatpush.bf16.msrb.mxu1 %v791_v47 }
  0x38   :  { %512 = vmatpush.bf16.msrb.mxu0 %v782_v48 }
  0x39   :  { %525 = vmatpush.bf16.msrb.mxu1 %v790_v49 }
  0x3c   :  { %513 = vmatpush.bf16.msrb.mxu0 %v781_v50 }
  0x3d   :  { %526 = vmatpush.bf16.msrb.mxu1 %v789_v51 }
  0x40   :  { %514 = vmatpush.bf16.msrb.mxu0 %v780_v52 }
  0x41   :  { %527 = vmatpush.bf16.msrb.mxu1 %v788_v53 }
  0x44   :  { %515 = vmatpush.bf16.msrb.mxu0 %v779_v54 }
  0x45   :  { %528 = vmatpush.bf16.msrb.mxu1 %v787_v55 }
  0x48   :  { %516 = vmatpush.bf16.msrb.mxu0 %v778_v59 }
  0x49   :  { %529 = vmatpush.bf16.msrb.mxu1 %v786_v60 }
  0x4b   :  { %517 = vmatmul.bf16.vlgmr.msrb.gmra.mxu0 %v161_v61 }
  0x4c   :  { %530 = vmatmul.bf16.vlgmr.msrb.gmra.mxu1 %v162_v62 }
  0xa8   :  { %v466_v63 = vpop.f32.mrf.mxu0 }
  0xa9   :  { %v479_v0 = vpop.f32.mrf.mxu1  ;;  %v467_v6 = vadd.f32 %v799_v5, %v466_v63 }
  0xab   :  { %v480_v9 = vadd.f32 %v479_v0, %v467_v6 }
  0xb0   :  { %v468_v1 = vpop.f32.mrf.mxu0  ;;  %v492_v3 = vpop.f32.mrf.mxu2 }
  0xb1   :  { %v481_v2 = vpop.f32.mrf.mxu1  ;;  %v505_v4 = vpop.f32.mrf.mxu3  ;;  %v493_v10 = vadd.f32 %v492_v3, %v480_v9 }
  0xb3   :  { %v506_v11 = vadd.f32 %v505_v4, %v493_v10 }
  0xb8   :  { %v494_v7 = vpop.f32.mrf.mxu2 }
  0xb9   :  { %v507_v8 = vpop.f32.mrf.mxu3 }
  0xc8   :  { %v518_v12 = vpop.f32.mrf.mxu0 }
  0xc9   :  { %v531_v13 = vpop.f32.mrf.mxu1  ;;  %v519_v14 = vadd.f32 %v518_v12, %v506_v11 }
  0xcb   :  { %v532_v15 = vadd.f32 %v531_v13, %v519_v14 }
  0xcd   :  { %535 = vst [vmem:[#allocation7] sm:$0xff] %v532_v15 }
  0xce   :  { %546 = dma.vmem_to_hbm [thread:$0]  %s542_s25, 128, %s544_s28, [#allocation4]  }
  0xd0   :  { %v520_v16 = vpop.f32.mrf.mxu0 }
  0xd1   :  { %v533_v17 = vpop.f32.mrf.mxu1 }
  0xd2   :  { %876 = dma.done.wait [#allocation4], 128  }
  0xd3   :  { %877 = vsyncadd [#allocation4], 4294967168 }
  0xd4   :  { %551 = vsyncpa [#allocation3], 1 }
  0xd5   :  { %552 = vsyncpa [#allocation6], 1 }
  0xd6   :  { %553 = vsyncpa [#allocation4], 1 }

</bundles_post_ra>
